<compile_context>
chip_gen: v7x
topology: tpu7x:2x2x1
jax: 0.10.0
libtpu: 0.0.40
codegen_flags: <defaults>
</compile_context>

<pallas_src>
import functools
import math

import jax
import jax.numpy as jnp
from jax.experimental import pallas as pl
from jax.experimental.pallas import tpu as pltpu

_INV_SQRT2 = 1.0 / math.sqrt(2.0)


def _ffn_kernel(*refs, add_residual):
    # With residual:    (x, res, w1, b1, w2, b2, out)
    # Without residual: (x,      w1, b1, w2, b2, out)
    if add_residual:
        x_ref, res_ref, w1_ref, b1_ref, w2_ref, b2_ref, o_ref = refs
    else:
        x_ref, w1_ref, b1_ref, w2_ref, b2_ref, o_ref = refs
        res_ref = None

    x = x_ref[...]  # (tile_m, D)

    # layer1: (tile_m, D) @ (D, F) on the MXU, f32 accumulation; bias adds on (tile_m, F)
    h = jnp.dot(x, w1_ref[...], preferred_element_type=jnp.float32) + b1_ref[...]

    # exact-erf GELU (matches torch.nn.GELU default)
    h = 0.5 * h * (1.0 + jax.lax.erf(h * _INV_SQRT2))

    # layer2: (tile_m, F) @ (F, D) on the MXU, f32 accumulation
    y = jnp.dot(h.astype(w2_ref.dtype), w2_ref[...], preferred_element_type=jnp.float32)
    y = y + b2_ref[...]

    # residual add (dropout / drop_path are identity at inference)
    # TODO(synk): train-time nn.Dropout / DropPath stochasticity is not implemented.
    if add_residual:
        y = y + res_ref[...].astype(jnp.float32)

    # single full-tile, lane-dense store (D on the 128-lane axis)
    o_ref[...] = y.astype(o_ref.dtype)


def elastic_ffn(x, w1, b1, w2, b2, residual=None, *, add_residual=True,
                tile_m=None, mxu_dtype=None):
    """ElasticFFN forward.

    x:        [B, N, D]
    w1, b1:   [F, D], [F]   (layer1, nn.Linear convention)
    w2, b2:   [D, F], [D]   (layer2)
    residual: [B, N, D] or None (defaults to x when add_residual)
    Returns   [B, N, D]
    """
    B, N, D = x.shape
    F = w1.shape[0]
    out_dtype = x.dtype

    if residual is None:
        residual = x

    # Fold batch*seq into one token axis M so the MXU sees large-M matmuls.
    M = B * N
    x2 = x.reshape(M, D)
    r2 = residual.reshape(M, D)

    if tile_m is None:
        tile_m = min(256, M)
    tile_m = max(8, (tile_m // 8) * 8)

    # Pad M up to a multiple of tile_m (padded rows are sliced off afterwards).
    Mp = ((M + tile_m - 1) // tile_m) * tile_m
    if Mp != M:
        pad = Mp - M
        x2 = jnp.pad(x2, ((0, pad), (0, 0)))
        r2 = jnp.pad(r2, ((0, pad), (0, 0)))

    w1_t = w1.T                 # (D, F)
    w2_t = w2.T                 # (F, D)
    b1_2 = b1.reshape(1, F)
    b2_2 = b2.reshape(1, D)

    if mxu_dtype is not None:
        # bf16-native MXU path (v6e/v7x); biases / accumulation stay f32.
        x2 = x2.astype(mxu_dtype)
        w1_t = w1_t.astype(mxu_dtype)
        w2_t = w2_t.astype(mxu_dtype)

    in_specs = [pl.BlockSpec((tile_m, D), lambda i: (i, 0))]
    operands = [x2]
    if add_residual:
        in_specs.append(pl.BlockSpec((tile_m, D), lambda i: (i, 0)))
        operands.append(r2)
    in_specs += [
        pl.BlockSpec((D, F), lambda i: (0, 0)),   # w1 (VMEM-resident across grid)
        pl.BlockSpec((1, F), lambda i: (0, 0)),   # b1
        pl.BlockSpec((F, D), lambda i: (0, 0)),   # w2
        pl.BlockSpec((1, D), lambda i: (0, 0)),   # b2
    ]
    operands += [w1_t, b1_2, w2_t, b2_2]

    out = pl.pallas_call(
        functools.partial(_ffn_kernel, add_residual=add_residual),
        out_shape=jax.ShapeDtypeStruct((Mp, D), out_dtype),
        grid_spec=pltpu.PrefetchScalarGridSpec(
            num_scalar_prefetch=0,
            grid=(Mp // tile_m,),
            in_specs=in_specs,
            out_specs=pl.BlockSpec((tile_m, D), lambda i: (i, 0)),
        ),
        compiler_params=pltpu.CompilerParams(
            dimension_semantics=("parallel",),   # token tiles are independent -> v7x dual-TC
        ),
    )(*operands)

    return out[:M].reshape(B, N, D)


def reference(x, w1, b1, w2, b2, residual=None, add_residual=True):
    """Pure-JAX reference mirroring the PyTorch eval-mode forward."""
    h = jnp.einsum("bnd,fd->bnf", x, w1) + b1
    h = 0.5 * h * (1.0 + jax.lax.erf(h / jnp.sqrt(2.0)))   # exact GELU
    y = jnp.einsum("bnf,df->bnd", h, w2) + b2
    if not add_residual:
        return y
    if residual is None:
        residual = x
    return y + residual


if __name__ == "__main__":
    B, N = 2, 64
    D, F = 128, 256        # embed_dim, feedforward_channels

    key = jax.random.PRNGKey(0)
    kx, kr, k1w, k1b, k2w, k2b = jax.random.split(key, 6)

    x = jax.random.normal(kx, (B, N, D), dtype=jnp.float32)
    residual = jax.random.normal(kr, (B, N, D), dtype=jnp.float32)

    # nn.Linear-style parameters
    w1 = jax.random.normal(k1w, (F, D), dtype=jnp.float32) * (1.0 / math.sqrt(D))
    b1 = jax.random.normal(k1b, (F,), dtype=jnp.float32) * 0.1
    w2 = jax.random.normal(k2w, (D, F), dtype=jnp.float32) * (1.0 / math.sqrt(F))
    b2 = jax.random.normal(k2b, (D,), dtype=jnp.float32) * 0.1

    # explicit residual (the usual calling convention for this block)
    out = elastic_ffn(x, w1, b1, w2, b2, residual, add_residual=True, tile_m=64)
    out = jax.block_until_ready(out)
    ref = reference(x, w1, b1, w2, b2, residual, add_residual=True)
    assert out.shape == (B, N, D), out.shape
    assert jnp.allclose(out, ref, rtol=1e-3, atol=1e-3), float(jnp.max(jnp.abs(out - ref)))

    # no-residual path (add_residual=False)
    out2 = elastic_ffn(x, w1, b1, w2, b2, add_residual=False, tile_m=64)
    out2 = jax.block_until_ready(out2)
    ref2 = reference(x, w1, b1, w2, b2, add_residual=False)
    assert jnp.allclose(out2, ref2, rtol=1e-3, atol=1e-3), float(jnp.max(jnp.abs(out2 - ref2)))

    print("KERNEL_OK")
</pallas_src>

<mosaic_0001>
module attributes {stable_mosaic.version = 11 : i64} {
  func.func @_ffn_kernel(%arg0: i32, %arg1: memref<64x128xf32, #tpu.memory_space<vmem>>, %arg2: memref<64x128xf32, #tpu.memory_space<vmem>>, %arg3: memref<128x256xf32, #tpu.memory_space<vmem>>, %arg4: memref<1x256xf32, #tpu.memory_space<vmem>>, %arg5: memref<256x128xf32, #tpu.memory_space<vmem>>, %arg6: memref<1x128xf32, #tpu.memory_space<vmem>>, %arg7: memref<64x128xf32, #tpu.memory_space<vmem>>) attributes {dimension_semantics = [#tpu.dimension_semantics<parallel>], iteration_bounds = array<i64: 2>, scalar_prefetch = 0 : i64, scratch_operands = 0 : i64, tpu.core_type = #tpu.core_type<tc>, window_params = [{transform_indices = @transform_0, window_bounds = array<i64: 64, 128>}, {transform_indices = @transform_1, window_bounds = array<i64: 64, 128>}, {pipeline_mode = #tpu.pipeline_mode<synchronous>, transform_indices = @transform_2, window_bounds = array<i64: 128, 256>}, {pipeline_mode = #tpu.pipeline_mode<synchronous>, transform_indices = @transform_3, window_bounds = array<i64: 1, 256>}, {pipeline_mode = #tpu.pipeline_mode<synchronous>, transform_indices = @transform_4, window_bounds = array<i64: 256, 128>}, {pipeline_mode = #tpu.pipeline_mode<synchronous>, transform_indices = @transform_5, window_bounds = array<i64: 1, 128>}, {transform_indices = @transform_6, window_bounds = array<i64: 64, 128>}]} {
    %c0 = arith.constant 0 : index
    %c0_0 = arith.constant 0 : index
    %0 = vector.load %arg1[%c0, %c0_0] : memref<64x128xf32, #tpu.memory_space<vmem>>, vector<64x128xf32>
    %c0_1 = arith.constant 0 : index
    %c0_2 = arith.constant 0 : index
    %1 = vector.load %arg3[%c0_1, %c0_2] : memref<128x256xf32, #tpu.memory_space<vmem>>, vector<128x256xf32>
    %cst = arith.constant dense<0.000000e+00> : vector<64x256xf32>
    %2 = tpu.matmul %0, %1, %cst {dimension_numbers = #tpu.dot_dimension_numbers<[1], [0], [0], [1], [0, 0, 1, 1], [], []>} : vector<64x128xf32>, vector<128x256xf32>, vector<64x256xf32> -> vector<64x256xf32>
    %c0_3 = arith.constant 0 : index
    %c0_4 = arith.constant 0 : index
    %3 = vector.load %arg4[%c0_3, %c0_4] : memref<1x256xf32, #tpu.memory_space<vmem>>, vector<1x256xf32>
    %4 = vector.broadcast %3 : vector<1x256xf32> to vector<64x256xf32>
    %5 = arith.addf %2, %4 : vector<64x256xf32>
    %cst_5 = arith.constant 5.000000e-01 : f32
    %6 = vector.broadcast %cst_5 : f32 to vector<64x256xf32>
    %7 = arith.mulf %6, %5 : vector<64x256xf32>
    %cst_6 = arith.constant 0.707106769 : f32
    %8 = vector.broadcast %cst_6 : f32 to vector<64x256xf32>
    %9 = arith.mulf %5, %8 : vector<64x256xf32>
    %10 = math.erf %9 : vector<64x256xf32>
    %cst_7 = arith.constant 1.000000e+00 : f32
    %11 = vector.broadcast %cst_7 : f32 to vector<64x256xf32>
    %12 = arith.addf %11, %10 : vector<64x256xf32>
    %13 = arith.mulf %7, %12 : vector<64x256xf32>
    %c0_8 = arith.constant 0 : index
    %c0_9 = arith.constant 0 : index
    %14 = vector.load %arg5[%c0_8, %c0_9] : memref<256x128xf32, #tpu.memory_space<vmem>>, vector<256x128xf32>
    %cst_10 = arith.constant dense<0.000000e+00> : vector<64x128xf32>
    %15 = tpu.matmul %13, %14, %cst_10 {dimension_numbers = #tpu.dot_dimension_numbers<[1], [0], [0], [1], [0, 0, 1, 1], [], []>} : vector<64x256xf32>, vector<256x128xf32>, vector<64x128xf32> -> vector<64x128xf32>
    %c0_11 = arith.constant 0 : index
    %c0_12 = arith.constant 0 : index
    %16 = vector.load %arg6[%c0_11, %c0_12] : memref<1x128xf32, #tpu.memory_space<vmem>>, vector<1x128xf32>
    %17 = vector.broadcast %16 : vector<1x128xf32> to vector<64x128xf32>
    %18 = arith.addf %15, %17 : vector<64x128xf32>
    %c0_13 = arith.constant 0 : index
    %c0_14 = arith.constant 0 : index
    %19 = vector.load %arg2[%c0_13, %c0_14] : memref<64x128xf32, #tpu.memory_space<vmem>>, vector<64x128xf32>
    %20 = arith.addf %18, %19 : vector<64x128xf32>
    %c0_15 = arith.constant 0 : index
    %c0_16 = arith.constant 0 : index
    %21 = vector.load %arg7[%c0_15, %c0_16] : memref<64x128xf32, #tpu.memory_space<vmem>>, vector<64x128xf32>
    tpu.vector_store %arg7[%c0_15, %c0_16], %20 {strides = array<i32>} : memref<64x128xf32, #tpu.memory_space<vmem>>, vector<64x128xf32>,
    return
  }
  func.func @transform_0(%arg0: i32) -> (i32, i32) {
    %c0_i32 = arith.constant 0 : i32
    %c0_i32_0 = arith.constant 0 : i32
    return %arg0, %c0_i32 : i32, i32
  }
  func.func @transform_1(%arg0: i32) -> (i32, i32) {
    %c0_i32 = arith.constant 0 : i32
    %c0_i32_0 = arith.constant 0 : i32
    return %arg0, %c0_i32 : i32, i32
  }
  func.func @transform_2(%arg0: i32) -> (i32, i32) {
    %c0_i32 = arith.constant 0 : i32
    %c0_i32_0 = arith.constant 0 : i32
    %c0_i32_1 = arith.constant 0 : i32
    return %c0_i32, %c0_i32_0 : i32, i32
  }
  func.func @transform_3(%arg0: i32) -> (i32, i32) {
    %c0_i32 = arith.constant 0 : i32
    %c0_i32_0 = arith.constant 0 : i32
    %c0_i32_1 = arith.constant 0 : i32
    return %c0_i32, %c0_i32_0 : i32, i32
  }
  func.func @transform_4(%arg0: i32) -> (i32, i32) {
    %c0_i32 = arith.constant 0 : i32
    %c0_i32_0 = arith.constant 0 : i32
    %c0_i32_1 = arith.constant 0 : i32
    return %c0_i32, %c0_i32_0 : i32, i32
  }
  func.func @transform_5(%arg0: i32) -> (i32, i32) {
    %c0_i32 = arith.constant 0 : i32
    %c0_i32_0 = arith.constant 0 : i32
    %c0_i32_1 = arith.constant 0 : i32
    return %c0_i32, %c0_i32_0 : i32, i32
  }
  func.func @transform_6(%arg0: i32) -> (i32, i32) {
    %c0_i32 = arith.constant 0 : i32
    %c0_i32_0 = arith.constant 0 : i32
    return %arg0, %c0_i32 : i32, i32
  }
}

</mosaic_0001>

<bundles_post_ra>
// kernel: tpu_custom_call.1
= control target key start
LH: loop header
LB: loop body
LE: loop exit
PB: predicated region body
PF: predicated region fallthrough
CT: control target
= control target key end

     0   :  { %s1755_s0 = inlined_call_operand.hbm [shape: f32[128,128], index: 0, kind: input, shape index: {}]   ;;  %s1756_s1 = inlined_call_operand.hbm [shape: f32[128,128], index: 1, kind: input, shape index: {}]   ;;  %s1757_s2 = inlined_call_operand.hbm [shape: f32[128,256], index: 2, kind: input, shape index: {}]   ;;  %s1758_s3 = inlined_call_operand.vmem [shape: f32[1,256], index: 3, kind: input, shape index: {}]   ;;  %s1759_s4 = inlined_call_operand.hbm [shape: f32[256,128], index: 4, kind: input, shape index: {}]   ;;  %s1760_s5 = inlined_call_operand.vmem [shape: f32[1,128], index: 5, kind: input, shape index: {}]   ;;  %s1761_s6 = inlined_call_operand.hbm [shape: f32[128,128], index: 6, kind: output, shape index: {}]  }
   0x1   :  { %1769 = sst [smem:[#allocation16_spill]] %s1755_s0 }
   0x2   :  { %1770 = sst [smem:[#allocation17_spill]] %s1757_s2 }
   0x3   :  { %1771 = sst [smem:[#allocation18_spill]] %s1759_s4 }
   0x4   :  { %11 = vsyncpa [#allocation3], 0 }
   0x5   :  { %13 = vsyncpa [#allocation3 + $0x1], 0 }
   0x6   :  { %14 = vsyncpa [#allocation6], 0 }
   0x7   :  { %16 = vsyncpa [#allocation6 + $0x1], 0 }
   0x8   :  { %17 = vsyncpa [#allocation9], 0 }
   0x9   :  { %18 = vsyncpa [#allocation4], 0 }
   0xa   :  { %20 = vsyncpa [#allocation4 + $0x1], 0  ;;  %s1384_s21 = smov 0   ;;  %s1386_s22 = smov 0  }
   0xb   :  { %s1388_s23 = smov 0   ;;  %s1390_s24 = smov 0  }
   0xc LB: > { %s1405_s25 = sadd.s32 4294967295, %s1335_s24   ;;  %s884_s26 = sadd.s32 4294967294, %s1335_s24   ;;  %s1335_s24 = sphi %s1390_s24, %s1795_s24   ;;  %s1331_s23 = sphi %s1388_s23, %s1794_s23   ;;  %s1327_s22 = sphi %s1386_s22, %s1793_s22   ;;  %s1323_s21 = sphi %s1384_s21, %s1792_s21  }
   0xd   : > { %p46_p0 = scmp.ne.s32.totalorder %s1327_s22, %s1323_s21  ;;  %p1762_p1 = scmp.eq.s32.totalorder %s1405_s25, 0 }
   0xe   : > { %p186_p3 = scmp.eq.s32.totalorder %s884_s26, 1  ;;  %p885_p5 = scmp.ge.s32.totalorder %s1335_s24, 1 }
   0xf   : > { %p1414_p4 = por %p1762_p1, %p46_p0  ;;  %p193_p7 = scmp.lt.s32.totalorder %s1335_s24, 3 }
  0x10   : > { %p1419_p6 = por %p186_p3, %p46_p0  ;;  %s1337_s30 = smov [#allocation7]  }
  0x11   : > { %s1772_s27 = scalar_select %p1414_p4, 1, 0 }
  0x12   : > { %s1773_s28 = scalar_select %p1419_p6, 1, 0 }
  0x13   : > { %p1424_p8 = pnand %p885_p5, %p193_p7  ;;  %s205_s7 = sshll.u32 %s1337_s30, 4  ;;  %s1428_s7 = int_to_ptr.vmem [resolvable:$true] %s205_s7 }
  0x14   : > { %s1338_s9 = smov [#allocation8]   ;;  %s1776_s2 = sld [smem:[#allocation17_spill]] }
  0x15   : > { %p1044_p9 = pneg %p1424_p8  ;;  %s221_s10 = sshll.u32 %s1338_s9, 4  ;;  %s1439_s10 = int_to_ptr.vmem [resolvable:$true] %s221_s10 }
  0x17   : > { %p1435_p11 = pnand %p1044_p9, %p1762_p1 }
  0x19   : > { %p1143_p13 = pneg %p1435_p11 }
  0x1a   : > { %s1141_s13 = scalar_lea.hbm %s1776_s2, 4096 }
  0x1b   : > { %p1142_p12 = scmp.ne.s32.totalorder %s1776_s2, %s1141_s13  ;;  %p1148_p5 = scmp.lt.u32.totalorder %s1141_s13, %s1776_s2 }
  0x1d   : > { %p1144_p0 = pnand %p1143_p13, %p1142_p12 }
  0x1f   : > { %p1145_p3 = pneg %p1144_p0 }
  0x21   : > { %p1150_p7 = pnand %p1148_p5, %p1145_p3 }
  0x23   : > { %1153 = shalt.err (!%p1150_p7)
}
  0x24   : > { %s1154_s18 = scalar_lea.vmem %s1428_s7, 4096  ;;  %p1162_p2 = scmp.lt.s32.totalorder %s1428_s7, %s1428_s7 }
  0x25   : > { %p1155_p9 = scmp.ne.s32.totalorder %s1428_s7, %s1154_s18  ;;  %p1163_p12 = scmp.lt.s32.totalorder %s1154_s18, %s1154_s18 }
  0x27   : > { %p1157_p10 = pnand %p1155_p9, %p1143_p13  ;;  %p1164_p0 = por %p1163_p12, %p1162_p2 }
  0x29   : > { %p1158_p1 = pneg %p1157_p10 }
  0x2b   : > { %p1165_p6 = pnand %p1164_p0, %p1158_p1 }
  0x2d   : > { %1168 = shalt.err (!%p1165_p6)
}
  0x2e   : > { %s1339_s19 = smov 256   ;;  %s1340_s20 = smov 16  }
  0x2f   : > { %1047 = dma.hbm_to_vmem [thread:$0]  (!%p1435_p11), %s1776_s2, 4096, %s1428_s7, [#allocation6], %s1339_s19, %s1339_s19, %s1340_s20  }
  0x30   : > { %s1777_s4 = sld [smem:[#allocation18_spill]] }
  0x36   : > { %s1169_s12 = scalar_lea.hbm %s1777_s4, 4096 }
  0x37   : > { %p1170_p2 = scmp.ne.s32.totalorder %s1777_s4, %s1169_s12  ;;  %p1176_p10 = scmp.lt.u32.totalorder %s1169_s12, %s1777_s4 }
  0x39   : > { %p1172_p1 = pnand %p1170_p2, %p1143_p13 }
  0x3b   : > { %p1173_p6 = pneg %p1172_p1 }
  0x3d   : > { %p1178_p3 = pnand %p1176_p10, %p1173_p6 }
  0x3f   : > { %1181 = shalt.err (!%p1178_p3)
}
  0x40   : > { %s1182_s7 = scalar_lea.vmem %s1439_s10, 4096  ;;  %p1190_p12 = scmp.lt.s32.totalorder %s1439_s10, %s1439_s10 }
  0x41   : > { %p1183_p5 = scmp.ne.s32.totalorder %s1439_s10, %s1182_s7  ;;  %p1191_p0 = scmp.lt.s32.totalorder %s1182_s7, %s1182_s7 }
  0x43   : > { %p1185_p7 = pnand %p1183_p5, %p1143_p13  ;;  %p1192_p2 = por %p1191_p0, %p1190_p12 }
  0x45   : > { %p1186_p9 = pneg %p1185_p7 }
  0x47   : > { %p1193_p1 = pnand %p1192_p2, %p1186_p9 }
  0x49   : > { %1196 = shalt.err (!%p1193_p1)
}
  0x4a   : > { %s1763_s17 = smov 128   ;;  %s1765_s18 = smov 8  }
  0x4b   : > { %1050 = dma.hbm_to_vmem [thread:$0]  (!%p1435_p11), %s1777_s4, 4096, %s1439_s10, [#allocation9], %s1763_s17, %s1763_s17, %s1765_s18  }
  0x4c   : > { %s1497_s26 = sadd.s32 1, %s1335_s24   ;;  %s33_s9 = sadd.s32 1, %s1331_s23 }
  0x4d   : > { %s30_s30 = ssub.s32 %s1335_s24, %s1497_s26  ;;  %p40_p6 = scmp.ne.s32.totalorder %s1331_s23, %s1327_s22 }
  0x4e   : > { %p31_p13 = scmp.eq.s32.totalorder %s30_s30, 0  ;;  %p41_p10 = scmp.eq.s32.totalorder %s1335_s24, 0 }
  0x4f   : > { %p1778_p5 = scmp.eq.s32.totalorder %s1405_s25, 1  ;;  %p1064_p9 = scmp.lt.s32.totalorder %s1335_s24, 2 }
  0x50   : > { %s1506_s11 = scalar_select %p31_p13, %s1331_s23, %s33_s9  }
  0x51   : > { %p42_p3 = por %p41_p10, %p40_p6  ;;  %p1510_p7 = por %p1778_p5, %p40_p6 }
  0x52   : > { %s238_s12 = sand.u32 1, %s1331_s23   ;;  %s907_s10 = sshll.u32 %s1335_s24, 10 }
  0x53   : > { %s1779_s8 = scalar_select %p1510_p7, 1, 0 }
  0x54   : > { %s889_s13 = sshll.u32 %s238_s12, 6  ;;  %s1780_s0 = sld [smem:[#allocation16_spill]] }
  0x55   : > { %s242_s7 = scalar_lea.vmem [#allocation2], %s889_s13  ;;  %p1524_p11 = pnand %p1064_p9, %p42_p3 }
  0x56   : > { %s249_s19 = sshll.u32 %s242_s7, 4  ;;  %s1531_s14 = scalar_lea.hbm %s1756_s1, %s907_s10  ;;  %s1522_s19 = int_to_ptr.vmem [resolvable:$true] %s249_s19 }
  0x57   : > { %s263_s15 = scalar_lea.vmem [#allocation5], %s889_s13  ;;  %s1535_s18 = scalar_lea.sflag [#allocation3], %s238_s12 }
  0x58   : > { %s1533_s17 = sshll.u32 %s263_s15, 4  ;;  %p1199_p0 = pneg %p1524_p11  ;;  %s1567_s17 = int_to_ptr.vmem [resolvable:$true] %s1533_s17 }
  0x5a   : > { %s1520_s16 = scalar_lea.hbm %s1780_s0, %s907_s10  ;;  %s1202_s30 = scalar_lea.hbm %s1780_s0, 2048 }
  0x5b   : > { %s1197_s7 = scalar_lea.hbm %s1520_s16, 1024  ;;  %p1203_p13 = scmp.lt.u32.totalorder %s1520_s16, %s1780_s0 }
  0x5c   : > { %p1198_p12 = scmp.ne.s32.totalorder %s1520_s16, %s1197_s7  ;;  %p1204_p6 = scmp.lt.u32.totalorder %s1202_s30, %s1197_s7 }
  0x5d   : > { %p1206_p3 = scmp.lt.u32.totalorder %s1197_s7, %s1520_s16 }
  0x5e   : > { %p1200_p2 = pnand %p1199_p0, %p1198_p12  ;;  %p1205_p10 = por %p1204_p6, %p1203_p13 }
  0x60   : > { %p1201_p1 = pneg %p1200_p2  ;;  %p1207_p5 = por %p1206_p3, %p1205_p10 }
  0x62   : > { %p1208_p9 = pnand %p1207_p5, %p1201_p1 }
  0x64   : > { %1211 = shalt.err (!%p1208_p9)
}
  0x65   : > { %s1212_s12 = scalar_lea.vmem %s1522_s19, 1024  ;;  %s1343_s2 = smov [#allocation2]  }
  0x66   : > { %p1213_p12 = scmp.ne.s32.totalorder %s1522_s19, %s1212_s12  ;;  %s1217_s4 = sshll.u32 %s1343_s2, 4  ;;  %s1218_s4 = int_to_ptr.vmem [resolvable:$false] %s1217_s4 }
  0x67   : > { %s1219_s13 = scalar_lea.vmem %s1218_s4, 2048  ;;  %p1220_p4 = scmp.lt.s32.totalorder %s1522_s19, %s1218_s4 }
  0x68   : > { %p1215_p2 = pnand %p1213_p12, %p1199_p0  ;;  %p1221_p13 = scmp.lt.s32.totalorder %s1219_s13, %s1212_s12 }
  0x6a   : > { %p1216_p7 = pneg %p1215_p2  ;;  %p1222_p6 = por %p1221_p13, %p1220_p4 }
  0x6c   : > { %p1223_p10 = pnand %p1222_p6, %p1216_p7 }
  0x6e   : > { %1226 = shalt.err (!%p1223_p10)
}
  0x6f   : > { %s1782_s15 = smov 8   ;;  %s1783_s7 = smov 128  }
  0x70   : > { %1054 = dma.hbm_to_vmem [thread:$0]  (!%p1524_p11), %s1520_s16, 1024, %s1522_s19, %s1535_s18, %s1783_s7, %s1783_s7, %s1782_s15  }
  0x71   : > { %s259_s30 = sand.u32 1, %s1335_s24   ;;  %s1227_s10 = scalar_lea.hbm %s1531_s14, 1024 }
  0x72   : > { %s1570_s9 = scalar_lea.sflag [#allocation6], %s259_s30  ;;  %p1228_p4 = scmp.ne.s32.totalorder %s1531_s14, %s1227_s10 }
  0x73   : > { %s1232_s4 = scalar_lea.hbm %s1756_s1, 2048  ;;  %p1233_p3 = scmp.lt.u32.totalorder %s1531_s14, %s1756_s1 }
  0x74   : > { %p1230_p7 = pnand %p1228_p4, %p1199_p0  ;;  %p1234_p5 = scmp.lt.u32.totalorder %s1232_s4, %s1227_s10 }
  0x75   : > { %p1236_p12 = scmp.lt.u32.totalorder %s1227_s10, %s1531_s14 }
  0x76   : > { %p1231_p1 = pneg %p1230_p7  ;;  %p1235_p9 = por %p1234_p5, %p1233_p3 }
  0x78   : > { %p1237_p2 = por %p1236_p12, %p1235_p9 }
  0x7a   : > { %p1238_p13 = pnand %p1237_p2, %p1231_p1 }
  0x7c   : > { %1241 = shalt.err (!%p1238_p13)
}
  0x7d   : > { %s1242_s18 = scalar_lea.vmem %s1567_s17, 1024  ;;  %s1344_s16 = smov [#allocation5]  }
  0x7e   : > { %p1243_p6 = scmp.ne.s32.totalorder %s1567_s17, %s1242_s18  ;;  %s1247_s19 = sshll.u32 %s1344_s16, 4  ;;  %s1248_s19 = int_to_ptr.vmem [resolvable:$false] %s1247_s19 }
  0x7f   : > { %s1249_s0 = scalar_lea.vmem %s1248_s19, 2048  ;;  %p1250_p7 = scmp.lt.s32.totalorder %s1567_s17, %s1248_s19 }
  0x80   : > { %p1245_p10 = pnand %p1243_p6, %p1199_p0  ;;  %p1251_p3 = scmp.lt.s32.totalorder %s1249_s0, %s1242_s18 }
  0x82   : > { %p1246_p4 = pneg %p1245_p10  ;;  %p1252_p5 = por %p1251_p3, %p1250_p7 }
  0x84   : > { %p1253_p9 = pnand %p1252_p5, %p1246_p4 }
  0x86   : > { %1256 = shalt.err (!%p1253_p9)
}
  0x87   : > { %1057 = dma.hbm_to_vmem [thread:$0]  (!%p1524_p11), %s1531_s14, 1024, %s1567_s17, %s1570_s9, %s1783_s7, %s1783_s7, %s1782_s15  }
  0x88   : > { %282 = sbr.rel (%p1424_p8) target bundleno = 683 (0x2ab), region = 44  ;;  %s1602_s30 = sand.u32 (!%p1424_p8), 1, %s1327_s22  }
  0x89   : > { %s1605_s10 = sshll.u32 (!%p1424_p8), %s1602_s30, 6  ;;  %s285_s20 = scalar_lea.sflag (!%p1424_p8), [#allocation3], %s1602_s30 }
  0x8a   : > { %s1609_s12 = scalar_lea.vmem (!%p1424_p8), [#allocation2], %s1605_s10  ;;  %p1784_p0 = scmp.ne.s32.totalorder (!%p1424_p8), %s1772_s27, 0 }
  0x8f   : > { %1302 = dma.done.wait (%p1784_p0), %s285_s20, 1024  }
  0x90   : > { %1304 = vsyncadd (%p1784_p0), %s285_s20, 4294966272  ;;  %s293_s29 = sand.u32 1, %s1405_s25   ;;  %s1617_s14 = scalar_lea.vmem [#allocation5], %s1605_s10 }
  0x91   : > { %s294_s17 = scalar_lea.sflag [#allocation6], %s293_s29 }
  0x92   : > { %1306 = dma.done.wait (%p1784_p0), %s294_s17, 1024  }
  0x93   : > { %1308 = vsyncadd (%p1784_p0), %s294_s17, 4294966272  ;;  %p1785_p8 = scmp.eq.s32.totalorder %s1405_s25, 0 }
  0x95   : > { %1310 = dma.done.wait (%p1785_p8), [#allocation6], 4096   ;;  %p1786_p11 = pmov %p1785_p8 }
  0x96   : > { %p1787_p1 = pmov %p1785_p8 }
  0x97   : > { %1312 = vsyncadd (%p1786_p11), [#allocation6], 4294963200 }
  0x98   : > { %1314 = dma.done.wait (%p1787_p1), [#allocation9], 4096   ;;  %p1788_p12 = pmov %p1787_p1 }
  0x99   : > { %v1345_v0 = vmov 0.0   ;;  %v351_v1 = vld [vmem:[#allocation7 + $0x8] sm:$0xff]  ;;  %v353_v2 = vld [vmem:[#allocation7 + $0x18] sm:$0xff]  ;;  %v350_v3 = vld [vmem:[#allocation7] sm:$0xff]  ;;  %s1688_s2 = scalar_lea.vmem [#allocation10], %s1605_s10  ;;  %s909_s4 = sshll.u32 %s1405_s25, 10 }
  0x9a   : > { %1316 = vsyncadd (%p1788_p12), [#allocation9], 4294963200  ;;  %458 = vmatprep.mubr.f32.mxu0 %v1345_v0  ;;  %v966_v4 = vpack.c.bf16 %v353_v2, %v351_v1  ;;  %v352_v5 = vld [vmem:[#allocation7 + $0x10] sm:$0xff]  ;;  %v355_v6 = vld [vmem:[#allocation7 + $0x28] sm:$0xff]  ;;  %s769_s13 = sshll.u32 %s1688_s2, 4  ;;  %s1708_s19 = scalar_lea.hbm %s1761_s6, %s909_s4  ;;  %s1710_s13 = int_to_ptr.vmem [resolvable:$true] %s769_s13 }
  0x9b   : > { %v357_v7 = vld [vmem:[#allocation7 + $0x38] sm:$0xff]  ;;  %v968_v8 = vpack.c.bf16 %v352_v5, %v350_v3  ;;  %v354_v10 = vld [vmem:[#allocation7 + $0x20] sm:$0xff]  ;;  %v356_v11 = vld [vmem:[#allocation7 + $0x30] sm:$0xff]  ;;  %s756_s0 = scalar_lea.sflag [#allocation4], %s1602_s30  ;;  %s1257_s10 = scalar_lea.vmem %s1710_s13, 1024 }
  0x9c   : > { %v970_v9 = vpack.c.bf16 %v357_v7, %v355_v6  ;;  %v359_v12 = vld [vmem:[#allocation7 + $0x48] sm:$0xff]  ;;  %967 = vmatprep.subr.bf16.mxu0 %v966_v4  ;;  %v361_v13 = vld [vmem:[#allocation7 + $0x58] sm:$0xff]  ;;  %v972_v14 = vpack.c.bf16 %v356_v11, %v354_v10  ;;  %v358_v16 = vld [vmem:[#allocation7 + $0x40] sm:$0xff]  ;;  %p1258_p2 = scmp.ne.s32.totalorder %s1710_s13, %s1257_s10  ;;  %p1789_p13 = scmp.ne.s32.totalorder %s1779_s8, 0 }
  0x9d   : > { %969 = vmatpush1.bf16.msra.mxu0 %v968_v8  ;;  %v974_v15 = vpack.c.bf16 %v361_v13, %v359_v12  ;;  %v360_v17 = vld [vmem:[#allocation7 + $0x50] sm:$0xff]  ;;  %v363_v18 = vld [vmem:[#allocation7 + $0x68] sm:$0xff]  ;;  %v365_v19 = vld [vmem:[#allocation7 + $0x78] sm:$0xff]  ;;  %s1346_s25 = smov [#allocation10]  }
  0x9e   : > { %971 = vmatprep.subr.bf16.mxu0 %v970_v9  ;;  %v976_v20 = vpack.c.bf16 %v360_v17, %v358_v16  ;;  %v978_v21 = vpack.c.bf16 %v365_v19, %v363_v18  ;;  %v362_v22 = vld [vmem:[#allocation7 + $0x60] sm:$0xff]  ;;  %v364_v23 = vld [vmem:[#allocation7 + $0x70] sm:$0xff]  ;;  %v367_v24 = vld [vmem:[#allocation7 + $0x88] sm:$0xff]  ;;  %p1259_p6 = pnand %p1258_p2, %p1789_p13  ;;  %s1261_s20 = sshll.u32 %s1346_s25, 4  ;;  %s1262_s20 = int_to_ptr.vmem [resolvable:$false] %s1261_s20 }
  0x9f   : > { %v369_v25 = vld [vmem:[#allocation7 + $0x98] sm:$0xff]  ;;  %v980_v26 = vpack.c.bf16 %v364_v23, %v362_v22  ;;  %v366_v27 = vld [vmem:[#allocation7 + $0x80] sm:$0xff]  ;;  %v368_v28 = vld [vmem:[#allocation7 + $0x90] sm:$0xff]  ;;  %p1264_p4 = scmp.lt.s32.totalorder %s1710_s13, %s1262_s20 }
  0xa0   : > { %v371_v29 = vld [vmem:[#allocation7 + $0xa8] sm:$0xff]  ;;  %v982_v30 = vpack.c.bf16 %v369_v25, %v367_v24  ;;  %v373_v31 = vld [vmem:[#allocation7 + $0xb8] sm:$0xff]  ;;  %v603_v32 = vld [vmem:[#allocation8 + $0x80] sm:$0xff]  ;;  %v984_v42 = vpack.c.bf16 %v368_v28, %v366_v27  ;;  %p1260_p10 = pneg %p1259_p6 }
  0xa1   : > { %973 = vmatpush1.bf16.msra.mxu0 %v972_v14  ;;  %v604_v33 = vld [vmem:[#allocation8 + $0x88] sm:$0xff]  ;;  %v587_v35 = vld [vmem:[#allocation8] sm:$0xff]  ;;  %v605_v37 = vld [vmem:[#allocation8 + $0x90] sm:$0xff]  ;;  %v986_v46 = vpack.c.bf16 %v373_v31, %v371_v29 }
  0xa2   : > { %975 = vmatprep.subr.bf16.mxu0 %v974_v15  ;;  %v998_v34 = vpack.c.bf16 %v604_v33, %v603_v32  ;;  %v588_v36 = vld [vmem:[#allocation8 + $0x8] sm:$0xff]  ;;  %v606_v39 = vld [vmem:[#allocation8 + $0x98] sm:$0xff]  ;;  %v589_v40 = vld [vmem:[#allocation8 + $0x10] sm:$0xff] }
  0xa3   : > { %v1000_v38 = vpack.c.bf16 %v588_v36, %v587_v35  ;;  %v590_v41 = vld [vmem:[#allocation8 + $0x18] sm:$0xff]  ;;  %v1002_v43 = vpack.c.bf16 %v606_v39, %v605_v37  ;;  %v607_v44 = vld [vmem:[#allocation8 + $0xa0] sm:$0xff]  ;;  %v608_v45 = vld [vmem:[#allocation8 + $0xa8] sm:$0xff] }
  0xa4   : > { %999 = vmatprep.subr.bf16.mxu1 %v998_v34  ;;  %v370_v47 = vld [vmem:[#allocation7 + $0xa0] sm:$0xff]  ;;  %v372_v48 = vld [vmem:[#allocation7 + $0xb0] sm:$0xff]  ;;  %v375_v49 = vld [vmem:[#allocation7 + $0xc8] sm:$0xff]  ;;  %v1004_v50 = vpack.c.bf16 %v590_v41, %v589_v40  ;;  %v1006_v52 = vpack.c.bf16 %v608_v45, %v607_v44  ;;  %v384_v41 = vlaneseq }
  0xa5   : > { %977 = vmatpush1.bf16.msra.mxu0 %v976_v20  ;;  %1001 = vmatpush3.bf16.msra.mxu1 %v1000_v38  ;;  %v377_v51 = vld [vmem:[#allocation7 + $0xd8] sm:$0xff]  ;;  %v591_v53 = vld [vmem:[#allocation8 + $0x20] sm:$0xff]  ;;  %v592_v54 = vld [vmem:[#allocation8 + $0x28] sm:$0xff]  ;;  %v988_v55 = vpack.c.bf16 %v372_v48, %v370_v47 }
  0xa6   : > { %979 = vmatprep.subr.bf16.mxu0 %v978_v21  ;;  %1003 = vmatprep.subr.bf16.mxu1 %v1002_v43  ;;  %v990_v56 = vpack.c.bf16 %v377_v51, %v375_v49  ;;  %v374_v57 = vld [vmem:[#allocation7 + $0xc0] sm:$0xff]  ;;  %v376_v58 = vld [vmem:[#allocation7 + $0xd0] sm:$0xff]  ;;  %v1008_v59 = vpack.c.bf16 %v592_v54, %v591_v53  ;;  %v379_v60 = vld [vmem:[#allocation7 + $0xe8] sm:$0xff] }
  0xa7   : > { %v381_v61 = vld [vmem:[#allocation7 + $0xf8] sm:$0xff]  ;;  %v992_v62 = vpack.c.bf16 %v376_v58, %v374_v57  ;;  %v378_v1 = vld [vmem:[#allocation7 + $0xe0] sm:$0xff]  ;;  %v380_v2 = vld [vmem:[#allocation7 + $0xf0] sm:$0xff] }
  0xa8   : > { %v994_v63 = vpack.c.bf16 %v381_v61, %v379_v60  ;;  %v996_v3 = vpack.c.bf16 %v380_v2, %v378_v1  ;;  %v342_v4 = vld [vmem:[%s1609_s12] sm:$0xff]  ;;  %v343_v5 = vld [vmem:[%s1609_s12 + $0x8] sm:$0xff]  ;;  %v344_v6 = vld [vmem:[%s1609_s12 + $0x10] sm:$0xff] }
  0xa9   : > { %981 = vmatpush1.bf16.msra.mxu0 %v980_v26  ;;  %1005 = vmatpush3.bf16.msra.mxu1 %v1004_v50  ;;  %v345_v7 = vld [vmem:[%s1609_s12 + $0x18] sm:$0xff]  ;;  %v346_v8 = vld [vmem:[%s1609_s12 + $0x20] sm:$0xff]  ;;  %v347_v9 = vld [vmem:[%s1609_s12 + $0x28] sm:$0xff] }
  0xaa   : > { %983 = vmatprep.subr.bf16.mxu0 %v982_v30  ;;  %1007 = vmatprep.subr.bf16.mxu1 %v1006_v52  ;;  %v348_v10 = vld [vmem:[%s1609_s12 + $0x30] sm:$0xff]  ;;  %v349_v11 = vld [vmem:[%s1609_s12 + $0x38] sm:$0xff]  ;;  %v611_v18 = vld [vmem:[#allocation8 + $0xc0] sm:$0xff]  ;;  %s1263_s12 = scalar_lea.vmem %s1262_s20, 2048 }
  0xab   : > { %v609_v12 = vld [vmem:[#allocation8 + $0xb0] sm:$0xff]  ;;  %v610_v13 = vld [vmem:[#allocation8 + $0xb8] sm:$0xff]  ;;  %v612_v19 = vld [vmem:[#allocation8 + $0xc8] sm:$0xff]  ;;  %p1265_p7 = scmp.lt.s32.totalorder %s1263_s12, %s1257_s10 }
  0xac   : > { %v1010_v14 = vpack.c.bf16 %v610_v13, %v609_v12  ;;  %v593_v15 = vld [vmem:[#allocation8 + $0x30] sm:$0xff]  ;;  %v594_v16 = vld [vmem:[#allocation8 + $0x38] sm:$0xff]  ;;  %v1014_v20 = vpack.c.bf16 %v612_v19, %v611_v18  ;;  %v595_v21 = vld [vmem:[#allocation8 + $0x40] sm:$0xff] }
  0xad   : > { %985 = vmatpush1.bf16.msra.mxu0 %v984_v42  ;;  %1009 = vmatpush3.bf16.msra.mxu1 %v1008_v59  ;;  %v1012_v17 = vpack.c.bf16 %v594_v16, %v593_v15  ;;  %v596_v22 = vld [vmem:[#allocation8 + $0x48] sm:$0xff]  ;;  %v613_v24 = vld [vmem:[#allocation8 + $0xd0] sm:$0xff]  ;;  %v598_v27 = vld [vmem:[#allocation8 + $0x58] sm:$0xff]  ;;  %v385_v42 = vshrl.u32 %v384_v41, 7  ;;  %p1266_p3 = por %p1265_p7, %p1264_p4 }
  0xae   : > { %987 = vmatprep.subr.bf16.mxu0 %v986_v46  ;;  %1011 = vmatprep.subr.bf16.mxu1 %v1010_v14  ;;  %v1016_v23 = vpack.c.bf16 %v596_v22, %v595_v21  ;;  %v597_v26 = vld [vmem:[#allocation8 + $0x50] sm:$0xff]  ;;  %v615_v29 = vld [vmem:[#allocation8 + $0xe0] sm:$0xff]  ;;  %v616_v30 = vld [vmem:[#allocation8 + $0xe8] sm:$0xff] }
  0xaf   : > { %v1020_v28 = vpack.c.bf16 %v598_v27, %v597_v26  ;;  %v1022_v31 = vpack.c.bf16 %v616_v30, %v615_v29  ;;  %v599_v32 = vld [vmem:[#allocation8 + $0x60] sm:$0xff]  ;;  %v600_v33 = vld [vmem:[#allocation8 + $0x68] sm:$0xff]  ;;  %v617_v35 = vld [vmem:[#allocation8 + $0xf0] sm:$0xff]  ;;  %v386_v43 = vsub.s32 0, %v385_v42  ;;  %v390_v45 = vsub.s32 1, %v385_v42  ;;  %p1267_p5 = pnand %p1266_p3, %p1260_p10 }
  0xb0   : > { %v1024_v34 = vpack.c.bf16 %v600_v33, %v599_v32  ;;  %v618_v36 = vld [vmem:[#allocation8 + $0xf8] sm:$0xff]  ;;  %v601_v38 = vld [vmem:[#allocation8 + $0x70] sm:$0xff]  ;;  %v382_v44 = vld [vmem:[%s1758_s3] sm:$0x3] }
  0xb1   : > { %989 = vmatpush1.bf16.msra.mxu0 %v988_v55  ;;  %1013 = vmatpush3.bf16.msra.mxu1 %v1012_v17  ;;  %v1026_v37 = vpack.c.bf16 %v618_v36, %v617_v35  ;;  %v602_v39 = vld [vmem:[#allocation8 + $0x78] sm:$0xff]  ;;  %v1650_v46 = vrot.slane %v382_v44, %v386_v43  ;;  %v1652_v47 = vrot.slane %v382_v44, %v390_v45 }
  0xb2   : > { %991 = vmatprep.subr.bf16.mxu0 %v990_v56  ;;  %1015 = vmatprep.subr.bf16.mxu1 %v1014_v20  ;;  %v1028_v40 = vpack.c.bf16 %v602_v39, %v601_v38 }
  0xb5   : > { %993 = vmatpush1.bf16.msra.mxu0 %v992_v62  ;;  %1017 = vmatpush3.bf16.msra.mxu1 %v1016_v23 }
  0xb6   : > { %995 = vmatprep.subr.bf16.mxu0 %v994_v63 }
  0xb9   : > { %997 = vmatpush1.bf16.msra.mxu0 %v996_v3 }
  0xbc   : > { %459 = vmatmul.mubr.f32.vlgmr.msra.gmra.mrb[0].mxu0 %v342_v4 }
  0xbd   : > { %464 = vmatprep.mubr.f32.mxu0 %v1345_v0 }
  0xc0   : > { %465 = vmatmul.mubr.f32.gmra.mrb[2].mxu0 %v343_v5 }
  0xc1   : > { %470 = vmatprep.mubr.f32.mxu0 %v1345_v0 }
  0xc4   : > { %471 = vmatmul.mubr.f32.gmra.mrb[4].mxu0 %v344_v6 }
  0xc5   : > { %476 = vmatprep.mubr.f32.mxu0 %v1345_v0 }
  0xc8   : > { %477 = vmatmul.mubr.f32.gmra.mrb[6].mxu0 %v345_v7 }
  0xc9   : > { %482 = vmatprep.mubr.f32.mxu0 %v1345_v0 }
  0xcc   : > { %483 = vmatmul.mubr.f32.gmra.mrb[8].mxu0 %v346_v8 }
  0xcd   : > { %488 = vmatprep.mubr.f32.mxu0 %v1345_v0 }
  0xd0   : > { %489 = vmatmul.mubr.f32.gmra.mrb[10].mxu0 %v347_v9 }
  0xd1   : > { %494 = vmatprep.mubr.f32.mxu0 %v1345_v0 }
  0xd4   : > { %495 = vmatmul.mubr.f32.gmra.mrb[12].mxu0 %v348_v10 }
  0xd5   : > { %500 = vmatprep.mubr.f32.mxu0 %v1345_v0  ;;  %v614_v0 = vld [vmem:[#allocation8 + $0xd8] sm:$0xff] }
  0xd6   : > { %v1018_v25 = vpack.c.bf16 %v614_v0, %v613_v24 }
  0xd8   : > { %501 = vmatmul.mubr.f32.gmra.mrb[14].mxu0 %v349_v11  ;;  %1019 = vmatprep.subr.bf16.mxu1 %v1018_v25 }
  0xd9   : > { %1021 = vmatpush3.bf16.msra.mxu1 %v1020_v28 }
  0xda   : > { %1023 = vmatprep.subr.bf16.mxu1 %v1022_v31 }
  0xdd   : > { %1025 = vmatpush3.bf16.msra.mxu1 %v1024_v34 }
  0xde   : > { %1027 = vmatprep.subr.bf16.mxu1 %v1026_v37 }
  0xe1   : > { %1029 = vmatpush3.bf16.msra.mxu1 %v1028_v40 }
 0x18f   : > { %v460_v48 = vpop.f32.mrb[0].mxu0 }
 0x190   : > { %v461_v49 = vadd.f32 %v460_v48, %v1650_v46  ;;  %v462_v50 = vpop.f32.mrb[1].mxu0 }
 0x191   : > { %v463_v51 = vadd.f32 %v462_v50, %v1652_v47 }
 0x192   : > { %v523_v52 = vmul.f32 0.70710677, %v461_v49  ;;  %v507_v17 = vmul.f32 0.5, %v461_v49 }
 0x193   : > { %v524_v53 = vmul.f32 0.70710677, %v463_v51  ;;  %v466_v54 = vpop.f32.mrb[2].mxu0  ;;  %v508_v15 = vmul.f32 0.5, %v463_v51 }
 0x194   : > { %1109 = verf.f32 %v523_v52  ;;  %v467_v55 = vadd.f32 %v466_v54, %v1650_v46  ;;  %v468_v56 = vpop.f32.mrb[3].mxu0 }
 0x195   : > { %1111 = verf.f32 %v524_v53  ;;  %v469_v57 = vadd.f32 %v468_v56, %v1652_v47 }
 0x196   : > { %v525_v58 = vmul.f32 0.70710677, %v467_v55  ;;  %v509_v30 = vmul.f32 0.5, %v467_v55 }
 0x197   : > { %v526_v59 = vmul.f32 0.70710677, %v469_v57  ;;  %v472_v60 = vpop.f32.mrb[4].mxu0  ;;  %v510_v26 = vmul.f32 0.5, %v469_v57 }
 0x198   : > { %1113 = verf.f32 %v525_v58  ;;  %v473_v61 = vadd.f32 %v472_v60, %v1650_v46  ;;  %v474_v62 = vpop.f32.mrb[5].mxu0 }
 0x199   : > { %1115 = verf.f32 %v526_v59  ;;  %v475_v63 = vadd.f32 %v474_v62, %v1652_v47 }
 0x19a   : > { %v527_v1 = vmul.f32 0.70710677, %v473_v61  ;;  %v511_v44 = vmul.f32 0.5, %v473_v61 }
 0x19b   : > { %v528_v2 = vmul.f32 0.70710677, %v475_v63  ;;  %v478_v3 = vpop.f32.mrb[6].mxu0  ;;  %v512_v40 = vmul.f32 0.5, %v475_v63 }
 0x19c   : > { %1117 = verf.f32 %v527_v1  ;;  %v1661_v4 = vadd.f32 %v478_v3, %v1650_v46  ;;  %v480_v5 = vpop.f32.mrb[7].mxu0 }
 0x19d   : > { %1119 = verf.f32 %v528_v2  ;;  %v481_v6 = vadd.f32 %v480_v5, %v1652_v47 }
 0x19e   : > { %v1110_v7 = vpop.eup %1109  ;;  %v529_v8 = vmul.f32 0.70710677, %v1661_v4  ;;  %v513_v60 = vmul.f32 0.5, %v1661_v4 }
 0x19f   : > { %v1112_v9 = vpop.eup %1111  ;;  %v555_v10 = vadd.f32 1.0, %v1110_v7  ;;  %v530_v11 = vmul.f32 0.70710677, %v481_v6  ;;  %v484_v12 = vpop.f32.mrb[8].mxu0  ;;  %v514_v56 = vmul.f32 0.5, %v481_v6 }
 0x1a0   : > { %1121 = verf.f32 %v529_v8  ;;  %v1666_v13 = vadd.f32 %v484_v12, %v1650_v46  ;;  %v486_v14 = vpop.f32.mrb[9].mxu0  ;;  %v556_v16 = vadd.f32 1.0, %v1112_v9 }
 0x1a1   : > { %1123 = verf.f32 %v530_v11  ;;  %v487_v18 = vadd.f32 %v486_v14, %v1652_v47  ;;  %v571_v25 = vmul.f32 %v555_v10, %v507_v17 }
 0x1a2   : > { %v1114_v19 = vpop.eup %1113  ;;  %v531_v20 = vmul.f32 0.70710677, %v1666_v13  ;;  %v572_v21 = vmul.f32 %v556_v16, %v508_v15 }
 0x1a3   : > { %v1116_v22 = vpop.eup %1115  ;;  %v557_v23 = vadd.f32 1.0, %v1114_v19  ;;  %v532_v24 = vmul.f32 0.70710677, %v487_v18  ;;  %v490_v0 = vpop.f32.mrb[10].mxu0  ;;  %v516_v6 = vmul.f32 0.5, %v487_v18 }
 0x1a4   : > { %v558_v27 = vadd.f32 1.0, %v1116_v22  ;;  %1125 = verf.f32 %v531_v20  ;;  %v1671_v28 = vadd.f32 %v490_v0, %v1650_v46  ;;  %v492_v29 = vpop.f32.mrb[11].mxu0  ;;  %690 = vmatprep.mubr.f32.mxu1 %v572_v21 }
 0x1a5   : > { %1127 = verf.f32 %v532_v24  ;;  %v493_v31 = vadd.f32 %v492_v29, %v1652_v47  ;;  %691 = vmatmul.mubr.f32.vlgmr.msra.gmra.mrb[0].mxu1 %v571_v25  ;;  %v573_v39 = vmul.f32 %v557_v23, %v509_v30 }
 0x1a6   : > { %v1118_v32 = vpop.eup %1117  ;;  %v533_v33 = vmul.f32 0.70710677, %v1671_v28  ;;  %v574_v34 = vmul.f32 %v558_v27, %v510_v26  ;;  %v517_v15 = vmul.f32 0.5, %v1671_v28 }
 0x1a7   : > { %v1120_v35 = vpop.eup %1119  ;;  %v559_v36 = vadd.f32 1.0, %v1118_v32  ;;  %v534_v37 = vmul.f32 0.70710677, %v493_v31  ;;  %v496_v38 = vpop.f32.mrb[12].mxu0  ;;  %v518_v12 = vmul.f32 0.5, %v493_v31 }
 0x1a8   : > { %v560_v41 = vadd.f32 1.0, %v1120_v35  ;;  %1129 = verf.f32 %v533_v33  ;;  %v497_v42 = vadd.f32 %v496_v38, %v1650_v46  ;;  %v498_v43 = vpop.f32.mrb[13].mxu0  ;;  %695 = vmatprep.mubr.f32.mxu1 %v574_v34  ;;  %v901_v33 = vld [vmem:[%s1760_s5] ss:$0 sm:$0xff] }
 0x1a9   : > { %1131 = verf.f32 %v534_v37  ;;  %v499_v45 = vadd.f32 %v498_v43, %v1652_v47  ;;  %696 = vmatmul.mubr.f32.gmra.mrb[2].mxu1 %v573_v39  ;;  %v575_v55 = vmul.f32 %v559_v36, %v511_v44  ;;  %v731_v36 = vld [vmem:[%s1617_s14] sm:$0xff] }
 0x1aa   : > { %v1122_v48 = vpop.eup %1121  ;;  %v535_v49 = vmul.f32 0.70710677, %v497_v42  ;;  %v576_v50 = vmul.f32 %v560_v41, %v512_v40  ;;  %v519_v22 = vmul.f32 0.5, %v497_v42  ;;  %v732_v42 = vld [vmem:[%s1617_s14 + $0x8] sm:$0xff] }
 0x1ab   : > { %v1124_v51 = vpop.eup %1123  ;;  %v561_v52 = vadd.f32 1.0, %v1122_v48  ;;  %v536_v53 = vmul.f32 0.70710677, %v499_v45  ;;  %v502_v54 = vpop.f32.mrb[14].mxu0  ;;  %v520_v21 = vmul.f32 0.5, %v499_v45 }
 0x1ac   : > { %v562_v57 = vadd.f32 1.0, %v1124_v51  ;;  %1133 = verf.f32 %v535_v49  ;;  %v503_v58 = vadd.f32 %v502_v54, %v1650_v46  ;;  %v504_v59 = vpop.f32.mrb[15].mxu0  ;;  %700 = vmatprep.mubr.f32.mxu1 %v576_v50  ;;  %v515_v46 = vmul.f32 0.5, %v1666_v13  ;;  %v733_v50 = vld [vmem:[%s1617_s14 + $0x10] sm:$0xff] }
 0x1ad   : > { %1135 = verf.f32 %v536_v53  ;;  %v505_v61 = vadd.f32 %v504_v59, %v1652_v47  ;;  %701 = vmatmul.mubr.f32.gmra.mrb[4].mxu1 %v575_v55  ;;  %v577_v7 = vmul.f32 %v561_v52, %v513_v60 }
 0x1ae   : > { %v1126_v62 = vpop.eup %1125  ;;  %v537_v63 = vmul.f32 0.70710677, %v503_v58  ;;  %v578_v1 = vmul.f32 %v562_v57, %v514_v56  ;;  %v521_v28 = vmul.f32 0.5, %v503_v58  ;;  %v734_v56 = vld [vmem:[%s1617_s14 + $0x18] sm:$0xff] }
 0x1af   : > { %v1128_v2 = vpop.eup %1127  ;;  %v563_v3 = vadd.f32 1.0, %v1126_v62  ;;  %v538_v5 = vmul.f32 0.70710677, %v505_v61  ;;  %v522_v27 = vmul.f32 0.5, %v505_v61  ;;  %v735_v62 = vld [vmem:[%s1617_s14 + $0x20] sm:$0xff] }
 0x1b0   : > { %v564_v8 = vadd.f32 1.0, %v1128_v2  ;;  %1137 = verf.f32 %v537_v63  ;;  %705 = vmatprep.mubr.f32.mxu1 %v578_v1 }
 0x1b1   : > { %1139 = verf.f32 %v538_v5  ;;  %706 = vmatmul.mubr.f32.gmra.mrb[6].mxu1 %v577_v7  ;;  %v579_v11 = vmul.f32 %v563_v3, %v515_v46  ;;  %v736_v7 = vld [vmem:[%s1617_s14 + $0x28] sm:$0xff] }
 0x1b2   : > { %v1130_v4 = vpop.eup %1129  ;;  %v580_v9 = vmul.f32 %v564_v8, %v516_v6 }
 0x1b3   : > { %v1132_v10 = vpop.eup %1131  ;;  %v565_v47 = vadd.f32 1.0, %v1130_v4 }
 0x1b4   : > { %v566_v14 = vadd.f32 1.0, %v1132_v10  ;;  %710 = vmatprep.mubr.f32.mxu1 %v580_v9  ;;  %v737_v10 = vld [vmem:[%s1617_s14 + $0x30] sm:$0xff] }
 0x1b5   : > { %711 = vmatmul.mubr.f32.gmra.mrb[8].mxu1 %v579_v11  ;;  %v581_v20 = vmul.f32 %v565_v47, %v517_v15 }
 0x1b6   : > { %v1134_v16 = vpop.eup %1133  ;;  %v582_v17 = vmul.f32 %v566_v14, %v518_v12 }
 0x1b7   : > { %v1136_v18 = vpop.eup %1135  ;;  %v567_v19 = vadd.f32 1.0, %v1134_v16  ;;  %v738_v16 = vld [vmem:[%s1617_s14 + $0x38] sm:$0xff] }
 0x1b8   : > { %v568_v13 = vadd.f32 1.0, %v1136_v18  ;;  %715 = vmatprep.mubr.f32.mxu1 %v582_v17 }
 0x1b9   : > { %716 = vmatmul.mubr.f32.gmra.mrb[10].mxu1 %v581_v20  ;;  %v583_v26 = vmul.f32 %v567_v19, %v519_v22 }
 0x1ba   : > { %v1138_v23 = vpop.eup %1137  ;;  %v584_v24 = vmul.f32 %v568_v13, %v520_v21 }
 0x1bb   : > { %v1140_v0 = vpop.eup %1139  ;;  %v569_v25 = vadd.f32 1.0, %v1138_v23 }
 0x1bc   : > { %v570_v29 = vadd.f32 1.0, %v1140_v0  ;;  %720 = vmatprep.mubr.f32.mxu1 %v584_v24 }
 0x1bd   : > { %721 = vmatmul.mubr.f32.gmra.mrb[12].mxu1 %v583_v26  ;;  %v585_v31 = vmul.f32 %v569_v25, %v521_v28 }
 0x1be   : > { %v586_v30 = vmul.f32 %v570_v29, %v522_v27 }
 0x1c0   : > { %725 = vmatprep.mubr.f32.mxu1 %v586_v30 }
 0x1c1   : > { %726 = vmatmul.mubr.f32.gmra.mrb[14].mxu1 %v585_v31 }
 0x278   : > { %v942_v32 = vpop.f32.mrb[0].mxu1 }
 0x279   : > { %v943_v34 = vpop.f32.mrb[1].mxu1 }
 0x27a   : > { %v944_v35 = vadd.f32 %v943_v34, %v942_v32 }
 0x27c   : > { %v693_v37 = vadd.f32 %v944_v35, %v901_v33  ;;  %v945_v38 = vpop.f32.mrb[2].mxu1 }
 0x27d   : > { %v946_v39 = vpop.f32.mrb[3].mxu1 }
 0x27e   : > { %v739_v40 = vadd.f32 %v731_v36, %v693_v37  ;;  %v947_v41 = vadd.f32 %v946_v39, %v945_v38 }
 0x280   : > { %747 = vst [vmem:[%s1688_s2] sm:$0xff] %v739_v40  ;;  %v698_v43 = vadd.f32 %v947_v41, %v901_v33  ;;  %v948_v44 = vpop.f32.mrb[4].mxu1 }
 0x281   : > { %v949_v45 = vpop.f32.mrb[5].mxu1 }
 0x282   : > { %v740_v48 = vadd.f32 %v732_v42, %v698_v43  ;;  %v950_v49 = vadd.f32 %v949_v45, %v948_v44 }
 0x284   : > { %748 = vst [vmem:[%s1688_s2 + $0x8] sm:$0xff] %v740_v48  ;;  %v703_v51 = vadd.f32 %v950_v49, %v901_v33  ;;  %v951_v52 = vpop.f32.mrb[6].mxu1 }
 0x285   : > { %v952_v53 = vpop.f32.mrb[7].mxu1 }
 0x286   : > { %v741_v54 = vadd.f32 %v733_v50, %v703_v51  ;;  %v953_v55 = vadd.f32 %v952_v53, %v951_v52 }
 0x288   : > { %749 = vst [vmem:[%s1688_s2 + $0x10] sm:$0xff] %v741_v54  ;;  %v708_v57 = vadd.f32 %v953_v55, %v901_v33  ;;  %v954_v58 = vpop.f32.mrb[8].mxu1 }
 0x289   : > { %v955_v59 = vpop.f32.mrb[9].mxu1 }
 0x28a   : > { %v742_v60 = vadd.f32 %v734_v56, %v708_v57  ;;  %v956_v61 = vadd.f32 %v955_v59, %v954_v58 }
 0x28c   : > { %750 = vst [vmem:[%s1688_s2 + $0x18] sm:$0xff] %v742_v60  ;;  %v713_v63 = vadd.f32 %v956_v61, %v901_v33  ;;  %v957_v1 = vpop.f32.mrb[10].mxu1 }
 0x28d   : > { %v958_v2 = vpop.f32.mrb[11].mxu1 }
 0x28e   : > { %v743_v3 = vadd.f32 %v735_v62, %v713_v63  ;;  %v959_v5 = vadd.f32 %v958_v2, %v957_v1 }
 0x290   : > { %751 = vst [vmem:[%s1688_s2 + $0x20] sm:$0xff] %v743_v3  ;;  %v718_v6 = vadd.f32 %v959_v5, %v901_v33  ;;  %v960_v8 = vpop.f32.mrb[12].mxu1 }
 0x291   : > { %v961_v46 = vpop.f32.mrb[13].mxu1 }
 0x292   : > { %v744_v4 = vadd.f32 %v736_v7, %v718_v6  ;;  %v962_v9 = vadd.f32 %v961_v46, %v960_v8 }
 0x294   : > { %752 = vst [vmem:[%s1688_s2 + $0x28] sm:$0xff] %v744_v4  ;;  %v723_v47 = vadd.f32 %v962_v9, %v901_v33  ;;  %v963_v11 = vpop.f32.mrb[14].mxu1 }
 0x295   : > { %v964_v12 = vpop.f32.mrb[15].mxu1 }
 0x296   : > { %v745_v14 = vadd.f32 %v737_v10, %v723_v47  ;;  %v965_v15 = vadd.f32 %v964_v12, %v963_v11 }
 0x298   : > { %753 = vst [vmem:[%s1688_s2 + $0x30] sm:$0xff] %v745_v14  ;;  %v728_v17 = vadd.f32 %v965_v15, %v901_v33 }
 0x29a   : > { %v746_v18 = vadd.f32 %v738_v16, %v728_v17 }
 0x29c   : > { %754 = vst [vmem:[%s1688_s2 + $0x38] sm:$0xff] %v746_v18 }
 0x29d   : > { %1270 = shalt.err (!%p1267_p5)
}
 0x29e   : > { %s1271_s29 = scalar_lea.hbm %s1708_s19, 1024  ;;  %s1275_s27 = scalar_lea.hbm %s1761_s6, 2048 }
 0x29f   : > { %p1272_p9 = scmp.ne.s32.totalorder %s1708_s19, %s1271_s29  ;;  %p1276_p11 = scmp.lt.u32.totalorder %s1708_s19, %s1761_s6 }
 0x2a0   : > { %p1277_p1 = scmp.lt.u32.totalorder %s1275_s27, %s1271_s29  ;;  %p1279_p2 = scmp.lt.u32.totalorder %s1271_s29, %s1708_s19 }
 0x2a1   : > { %p1273_p0 = pnand %p1272_p9, %p1789_p13 }
 0x2a2   : > { %p1278_p12 = por %p1277_p1, %p1276_p11 }
 0x2a3   : > { %p1274_p8 = pneg %p1273_p0 }
 0x2a4   : > { %p1280_p6 = por %p1279_p2, %p1278_p12 }
 0x2a6   : > { %p1281_p10 = pnand %p1280_p6, %p1274_p8 }
 0x2a8   : > { %1284 = shalt.err (!%p1281_p10)
}
 0x2a9   : > { %s1347_s9 = smov 128   ;;  %s1348_s2 = smov 8  }
 0x2aa   : > { %1042 = dma.vmem_to_hbm [thread:$0]  (%p1789_p13), %s1710_s13, 1024, %s1708_s19, %s756_s0, %s1347_s9, %s1347_s9, %s1348_s2  }
 0x2ab PF: > { %s784_s4 = sand.u32 1, %s1323_s21   ;;  %p1790_p4 = scmp.ne.s32.totalorder %s1773_s28, 0 }
 0x2ac   : > { %p1791_p7 = scmp.ge.s32.totalorder %s1335_s24, 2  ;;  %s785_s18 = scalar_lea.sflag [#allocation4], %s784_s4 }
 0x2ae   : > { %p1059_p3 = pnand %p1791_p7, %p1790_p4 }
 0x2b0   : > { %1318 = dma.done.wait (!%p1059_p3), %s785_s18, 1024  }
 0x2b1   : > { %1320 = vsyncadd (!%p1059_p3), %s785_s18, 4294966272  ;;  %p23_p5 = scmp.ge.s32.totalorder %s1497_s26, 4   ;;  %s1792_s21 = smov %s1327_s22 }
 0x2b2   : > { %s1793_s22 = smov %s1331_s23  ;;  %s1794_s23 = smov %s1506_s11 }
 0x2b3   : > { %s1795_s24 = smov %s1497_s26  ;;  %25 = sbr.rel (!%p23_p5) target bundleno = 12 (0xc), region = 110 }
 0x2ba   :  { %790 = vsyncpa [#allocation3], 1 }
 0x2bb   :  { %792 = vsyncpa [#allocation3 + $0x1], 1 }
 0x2bc   :  { %793 = vsyncpa [#allocation6], 1 }
 0x2bd   :  { %795 = vsyncpa [#allocation6 + $0x1], 1 }
 0x2be   :  { %796 = vsyncpa [#allocation9], 1 }
 0x2bf   :  { %797 = vsyncpa [#allocation4], 1 }
 0x2c0   :  { %799 = vsyncpa [#allocation4 + $0x1], 1 }

</bundles_post_ra>
